<compile_context>
chip_gen: v6e
topology: v6e:2x2x1
jax: 0.10.0
libtpu: 0.0.40
codegen_flags: <defaults>
</compile_context>

<pallas_src>
import functools

import jax
import jax.numpy as jnp
from jax.experimental import pallas as pl
from jax.experimental.pallas import tpu as pltpu

IN_FEATURES = 106
LANE = 128


def _round_up(n, m):
    return ((n + m - 1) // m) * m


def pics_mlp_kernel(x_ref, w1_ref, wb_ref, b2_ref, o_ref):
    """One batch tile of  relu( relu(x @ W1 + b1) . w2 + b2 ).

    x_ref : (TB, 106)     f32 or bf16  (pipelined per grid step, unpadded K)
    w1_ref: (106, H_pad)  same dtype   (resident; H zero-padded to 128)
    wb_ref: (2, H_pad)    f32          row 0 = b1, row 1 = w2^T (resident)
    b2_ref: (1, 1)        f32 in SMEM
    o_ref : (1, TB)       f32          (lane-dense output row)
    """
    # Layer 1 on the MXU; Mosaic pads the K=106 contraction internally.
    h = jnp.dot(x_ref[...], w1_ref[...], preferred_element_type=jnp.float32)
    h = jnp.maximum(h + wb_ref[0:1, :], 0.0)          # bias + ReLU on the VPU

    # Layer 2 (H -> 1): VPU multiply + XLU lane reduction (no N=1 MXU matmul).
    y = jnp.sum(h * wb_ref[1:2, :], axis=-1)          # (TB,)
    y = jnp.maximum(y + b2_ref[0, 0], 0.0)

    # Lane-dense store: (TB,) relayouts to lanes -> unmasked full-width vst.
    o_ref[...] = y[None, :]


@functools.partial(jax.jit, static_argnames=("tile_b", "semantics"))
def pics_model_forward(x, w1, b1, w2, b2, *, tile_b=4096, semantics="parallel"):
    """x: (B, 106); w1: (106, H); b1: (1, H); w2: (H, 1); b2: (1, 1) -> (B, 1).

    Compute dtype follows x.dtype (pass bf16 x for the reduced-bandwidth path);
    accumulation and the output are always f32.
    """
    B, K = x.shape
    H = w1.shape[1]
    H_pad = _round_up(H, LANE)                      # e.g. 32 -> 128

    # Batch tile: lane-aligned multiple of 128, capped for VMEM headroom on v7x.
    tb = min(_round_up(B, LANE), _round_up(min(tile_b, 8192), LANE))
    grid_b = pl.cdiv(B, tb)
    B_pad = grid_b * tb

    # Small resident weights (one-time, ~54 KiB): W1 padded H -> H_pad in the
    # compute dtype; b1 and w2^T packed into one (2, H_pad) f32 array.
    cdt = x.dtype
    w1_p = jnp.zeros((K, H_pad), cdt).at[:, :H].set(w1.astype(cdt))
    wb = jnp.zeros((2, H_pad), jnp.float32)
    wb = wb.at[0, :H].set(b1[0].astype(jnp.float32))
    wb = wb.at[1, :H].set(w2[:, 0].astype(jnp.float32))

    # Advisory cost: this kernel is bytes-bound, not flops-bound.
    itemsize = jnp.dtype(cdt).itemsize
    cost = pl.CostEstimate(
        flops=2 * B_pad * K * H_pad + 2 * B_pad * H_pad,
        transcendentals=0,
        bytes_accessed=(B_pad * K * itemsize            # x
                        + w1_p.size * itemsize          # W1 (resident)
                        + wb.size * 4 + 4               # b1/w2 row + b2
                        + B_pad * 4),                   # output
    )

    if semantics == "core_parallel":
        dim_sem = (pltpu.CORE_PARALLEL,)                # v7x: both TensorCores
    else:
        dim_sem = ("parallel",)

    out = pl.pallas_call(
        pics_mlp_kernel,
        out_shape=jax.ShapeDtypeStruct((1, B_pad), jnp.float32),
        grid=(grid_b,),
        in_specs=[
            pl.BlockSpec((tb, K), lambda i: (i, 0)),        # x tile (pipelined)
            pl.BlockSpec((K, H_pad), lambda i: (0, 0)),     # W1 (resident)
            pl.BlockSpec((2, H_pad), lambda i: (0, 0)),     # b1 / w2 row (resident)
            pl.BlockSpec(memory_space=pltpu.MemorySpace.SMEM),  # b2 scalar
        ],
        out_specs=pl.BlockSpec((1, tb), lambda i: (0, i)),  # lane-dense row
        compiler_params=pltpu.CompilerParams(dimension_semantics=dim_sem),
        cost_estimate=cost,
    )(x, w1_p, wb, b2.astype(jnp.float32))

    # Undo the lane-dense layout; drop padded / garbage tail rows.
    return out.reshape(-1)[:B].reshape(B, 1)


def _pick_semantics():
    """CORE_PARALLEL on v7x (2 TCs/chip); plain 'parallel' elsewhere."""
    try:
        kind = jax.devices()[0].device_kind.lower()
    except Exception:
        return "parallel"
    return "core_parallel" if "v7" in kind else "parallel"


def init_params(key, hidden_neurons):
    """Deterministic init mirroring nn.Linear's uniform(-1/sqrt(fan_in), ...)."""
    k1, k2, k3, k4 = jax.random.split(key, 4)
    bound1 = 1.0 / jnp.sqrt(jnp.float32(IN_FEATURES))
    bound2 = 1.0 / jnp.sqrt(jnp.float32(hidden_neurons))
    # Stored as (in, out), i.e. transposed vs PyTorch's (out, in).
    w1 = jax.random.uniform(k1, (IN_FEATURES, hidden_neurons), jnp.float32,
                            -bound1, bound1)
    b1 = jax.random.uniform(k2, (1, hidden_neurons), jnp.float32, -bound1, bound1)
    w2 = jax.random.uniform(k3, (hidden_neurons, 1), jnp.float32, -bound2, bound2)
    b2 = jax.random.uniform(k4, (1, 1), jnp.float32, -bound2, bound2)
    return w1, b1, w2, b2


def reference_forward(x, w1, b1, w2, b2):
    h = jnp.maximum(x @ w1 + b1, 0.0)
    return jnp.maximum(h @ w2 + b2, 0.0)


if __name__ == "__main__":
    key = jax.random.PRNGKey(0)
    k_params, k_x, k_x2 = jax.random.split(key, 3)

    hidden_neurons = 32
    batch = 8

    w1, b1, w2, b2 = init_params(k_params, hidden_neurons)
    x = jax.random.normal(k_x, (batch, IN_FEATURES), jnp.float32)
    ref = reference_forward(x, w1, b1, w2, b2)

    sem = _pick_semantics()
    try:
        out = jax.block_until_ready(
            pics_model_forward(x, w1, b1, w2, b2, semantics=sem))
    except Exception:
        # Fall back if core-parallel lowering is unavailable on this part.
        sem = "parallel"
        out = jax.block_until_ready(
            pics_model_forward(x, w1, b1, w2, b2, semantics=sem))
    assert out.shape == (batch, 1)
    assert jnp.allclose(out, ref, atol=1e-5, rtol=1e-5)

    # bf16 input path (f32 accumulation): caller supplies bf16 x directly so
    # the HBM traffic for x is actually halved (no wrapper-side cast pass).
    out_bf16 = jax.block_until_ready(
        pics_model_forward(x.astype(jnp.bfloat16), w1, b1, w2, b2, semantics=sem))
    assert out_bf16.shape == (batch, 1)
    assert jnp.allclose(out_bf16, ref, atol=5e-2, rtol=5e-2)

    # Multi-tile grid with a ragged last block (exercises cdiv grid + OOB tail
    # handling + lane-dense output reassembly) at a still-small shape.
    batch2 = 300
    x2 = jax.random.normal(k_x2, (batch2, IN_FEATURES), jnp.float32)
    ref2 = reference_forward(x2, w1, b1, w2, b2)
    out2 = jax.block_until_ready(
        pics_model_forward(x2, w1, b1, w2, b2, tile_b=128, semantics=sem))
    assert out2.shape == (batch2, 1)
    assert jnp.allclose(out2, ref2, atol=1e-5, rtol=1e-5)

    print("KERNEL_OK")
</pallas_src>

<mosaic_0001>
module attributes {stable_mosaic.version = 11 : i64} {
  func.func @pics_mlp_kernel(%arg0: i32, %arg1: memref<128x106xf32, #tpu.memory_space<vmem>>, %arg2: memref<106x128xf32, #tpu.memory_space<vmem>>, %arg3: memref<2x128xf32, #tpu.memory_space<vmem>>, %arg4: memref<1x1xf32, #tpu.memory_space<smem>>, %arg5: memref<1x128xf32, #tpu.memory_space<vmem>>) attributes {dimension_semantics = [#tpu.dimension_semantics<parallel>], iteration_bounds = array<i64: 1>, scalar_prefetch = 0 : i64, scratch_operands = 0 : i64, tpu.core_type = #tpu.core_type<tc>, window_params = [{transform_indices = @transform_0, window_bounds = array<i64: 128, 106>}, {pipeline_mode = #tpu.pipeline_mode<synchronous>, transform_indices = @transform_1, window_bounds = array<i64: 106, 128>}, {pipeline_mode = #tpu.pipeline_mode<synchronous>, transform_indices = @transform_2, window_bounds = array<i64: 2, 128>}, {transform_indices = @transform_3, window_bounds = array<i64: 1, 1>}, {transform_indices = @transform_4, window_bounds = array<i64: 1, 128>}]} {
    %c0 = arith.constant 0 : index
    %c0_0 = arith.constant 0 : index
    %0 = vector.load %arg1[%c0, %c0_0] : memref<128x106xf32, #tpu.memory_space<vmem>>, vector<128x106xf32>
    %c0_1 = arith.constant 0 : index
    %c0_2 = arith.constant 0 : index
    %1 = vector.load %arg2[%c0_1, %c0_2] : memref<106x128xf32, #tpu.memory_space<vmem>>, vector<106x128xf32>
    %cst = arith.constant dense<0.000000e+00> : vector<128x128xf32>
    %2 = tpu.matmul %0, %1, %cst {dimension_numbers = #tpu.dot_dimension_numbers<[1], [0], [0], [1], [0, 0, 1, 1], [], []>} : vector<128x106xf32>, vector<106x128xf32>, vector<128x128xf32> -> vector<128x128xf32>
    %c0_3 = arith.constant 0 : index
    %c0_4 = arith.constant 0 : index
    %3 = vector.load %arg3[%c0_3, %c0_4] : memref<2x128xf32, #tpu.memory_space<vmem>>, vector<1x128xf32>
    %4 = vector.broadcast %3 : vector<1x128xf32> to vector<128x128xf32>
    %5 = arith.addf %2, %4 : vector<128x128xf32>
    %cst_5 = arith.constant 0.000000e+00 : f32
    %6 = vector.broadcast %cst_5 : f32 to vector<128x128xf32>
    %7 = arith.maximumf %5, %6 : vector<128x128xf32>
    %c1 = arith.constant 1 : index
    %c0_6 = arith.constant 0 : index
    %8 = vector.load %arg3[%c1, %c0_6] : memref<2x128xf32, #tpu.memory_space<vmem>>, vector<1x128xf32>
    %9 = vector.broadcast %8 : vector<1x128xf32> to vector<128x128xf32>
    %10 = arith.mulf %7, %9 : vector<128x128xf32>
    %cst_7 = arith.constant dense<0.000000e+00> : vector<128xf32>
    %11 = vector.multi_reduction <add>, %10, %cst_7 [1] : vector<128x128xf32> to vector<128xf32>
    %c0_8 = arith.constant 0 : index
    %c0_9 = arith.constant 0 : index
    %12 = memref.load %arg4[%c0_8, %c0_9] : memref<1x1xf32, #tpu.memory_space<smem>>
    %13 = vector.broadcast %12 : f32 to vector<128xf32>
    %14 = arith.addf %11, %13 : vector<128xf32>
    %cst_10 = arith.constant 0.000000e+00 : f32
    %15 = vector.broadcast %cst_10 : f32 to vector<128xf32>
    %16 = arith.maximumf %14, %15 : vector<128xf32>
    %17 = vector.shape_cast %16 : vector<128xf32> to vector<1x128xf32>
    %c0_11 = arith.constant 0 : index
    %c0_12 = arith.constant 0 : index
    %18 = vector.load %arg5[%c0_11, %c0_12] : memref<1x128xf32, #tpu.memory_space<vmem>>, vector<1x128xf32>
    tpu.vector_store %arg5[%c0_11, %c0_12], %17 {strides = array<i32>} : memref<1x128xf32, #tpu.memory_space<vmem>>, vector<1x128xf32>,
    return
  }
  func.func @transform_0(%arg0: i32) -> (i32, i32) {
    %c0_i32 = arith.constant 0 : i32
    %c0_i32_0 = arith.constant 0 : i32
    return %arg0, %c0_i32 : i32, i32
  }
  func.func @transform_1(%arg0: i32) -> (i32, i32) {
    %c0_i32 = arith.constant 0 : i32
    %c0_i32_0 = arith.constant 0 : i32
    %c0_i32_1 = arith.constant 0 : i32
    return %c0_i32, %c0_i32_0 : i32, i32
  }
  func.func @transform_2(%arg0: i32) -> (i32, i32) {
    %c0_i32 = arith.constant 0 : i32
    %c0_i32_0 = arith.constant 0 : i32
    %c0_i32_1 = arith.constant 0 : i32
    return %c0_i32, %c0_i32_0 : i32, i32
  }
  func.func @transform_3(%arg0: i32) -> (i32, i32) {
    %c0_i32 = arith.constant 0 : i32
    %c0_i32_0 = arith.constant 0 : i32
    %c0_i32_1 = arith.constant 0 : i32
    return %c0_i32, %c0_i32_0 : i32, i32
  }
  func.func @transform_4(%arg0: i32) -> (i32, i32) {
    %c0_i32 = arith.constant 0 : i32
    %c0_i32_0 = arith.constant 0 : i32
    return %c0_i32, %arg0 : i32, i32
  }
}

</mosaic_0001>

<bundles_post_ra>
// kernel: pics_model_forward.1
= control target key start
LH: loop header
LB: loop body
LE: loop exit
PB: predicated region body
PF: predicated region fallthrough
CT: control target
= control target key end

     0   :  { %vm102_vm0 = vcmask 1041408   ;;  %vm53_vm1 = vcmask 867328   ;;  %vm381_vm2 = vcmask 130112   ;;  %vm388_vm3 = vcmask 195712   ;;  %s893_s1 = inlined_call_operand.vmem [shape: f32[106,128], index: 1, kind: input, shape index: {}]   ;;  %s894_s0 = inlined_call_operand.vmem [shape: f32[8,106], index: 0, kind: input, shape index: {}]   ;;  %s895_s2 = inlined_call_operand.vmem [shape: f32[2,128], index: 2, kind: input, shape index: {}]   ;;  %s896_s3 = inlined_call_operand.<no memory space> [shape: f32[1,1], index: 3, kind: input, shape index: {}]   ;;  %s897_s4 = inlined_call_operand.vmem [shape: f32[1,128], index: 4, kind: output, shape index: {}]  }
   0x1   :  { %v47_v0 = vld [vmem:[%s893_s1 + $0x68] sm:$0x3]  ;;  %v46_v1 = vld [vmem:[%s893_s1 + $0x60] sm:$0xff]  ;;  %v45_v2 = vld [vmem:[%s893_s1 + $0x58] sm:$0xff]  ;;  %vm395_vm4 = vcmask 261312   ;;  %vm402_vm5 = vcmask 326912  }
   0x2   :  { %536 = vmatprep.subr.msk.mxu0 %vm102_vm0, %v47_v0  ;;  %588 = vmatprep.subr.msk.mxu1 %vm102_vm0, %v47_v0  ;;  %v44_v3 = vld [vmem:[%s893_s1 + $0x50] sm:$0xff]  ;;  %v43_v4 = vld [vmem:[%s893_s1 + $0x48] sm:$0xff]  ;;  %v42_v5 = vld [vmem:[%s893_s1 + $0x40] sm:$0xff]  ;;  %vm409_vm6 = vcmask 392512   ;;  %vm416_vm7 = vcmask 458112   ;;  %vm423_vm8 = vcmask 523712  }
   0x3   :  { %537 = vmatpush3.msk.msra.mxu0 %vm102_vm0, %v47_v0  ;;  %602 = vmatpush3.msk.msra.mxu1 %vm102_vm0, %v47_v0  ;;  %v41_v6 = vld [vmem:[%s893_s1 + $0x38] sm:$0xff]  ;;  %v40_v7 = vld [vmem:[%s893_s1 + $0x30] sm:$0xff]  ;;  %v39_v8 = vld [vmem:[%s893_s1 + $0x28] sm:$0xff]  ;;  %vm430_vm9 = vcmask 589312   ;;  %vm437_vm10 = vcmask 654912   ;;  %vm444_vm11 = vcmask 720512  }
   0x4   :  { %538 = vmatprep.subr.mxu0 %v46_v1  ;;  %589 = vmatprep.subr.mxu1 %v46_v1  ;;  %v38_v9 = vld [vmem:[%s893_s1 + $0x20] sm:$0xff]  ;;  %v37_v10 = vld [vmem:[%s893_s1 + $0x18] sm:$0xff]  ;;  %v36_v11 = vld [vmem:[%s893_s1 + $0x10] sm:$0xff]  ;;  %vm451_vm12 = vcmask 786112   ;;  %vm458_vm13 = vcmask 851712   ;;  %vm465_vm14 = vcmask 917312  }
   0x5   :  { %539 = vmatpush3.msra.mxu0 %v46_v1  ;;  %603 = vmatpush3.msra.mxu1 %v46_v1  ;;  %v35_v12 = vld [vmem:[%s893_s1 + $0x8] sm:$0xff]  ;;  %v34_v13 = vld [vmem:[%s893_s1] sm:$0xff]  ;;  %v20_v18 = vld [vmem:[%s894_s0 + $0x10] sm:$0xff]  ;;  %vm472_vm15 = vcmask 982912   ;;  %vm479_vm0 = vcmask 1048512  }
   0x6   :  { %540 = vmatprep.subr.mxu0 %v45_v2  ;;  %590 = vmatprep.subr.mxu1 %v45_v2  ;;  %v18_v14 = vld [vmem:[%s894_s0] sm:$0xff]  ;;  %v19_v16 = vld [vmem:[%s894_s0 + $0x8] sm:$0xff]  ;;  %v28_v19 = vld [vmem:[%s894_s0 + $0x50] sm:$0xff] }
   0x7   :  { %541 = vmatpush3.msra.mxu0 %v45_v2  ;;  %604 = vmatpush3.msra.mxu1 %v45_v2  ;;  %v26_v15 = vld [vmem:[%s894_s0 + $0x40] sm:$0xff]  ;;  %v27_v17 = vld [vmem:[%s894_s0 + $0x48] sm:$0xff]  ;;  %v21_v20 = vld [vmem:[%s894_s0 + $0x18] sm:$0xff] }
   0x8   :  { %542 = vmatprep.subr.mxu0 %v44_v3  ;;  %591 = vmatprep.subr.mxu1 %v44_v3  ;;  %v29_v21 = vld [vmem:[%s894_s0 + $0x58] sm:$0xff]  ;;  %v22_v22 = vld [vmem:[%s894_s0 + $0x20] sm:$0xff]  ;;  %v23_v24 = vld [vmem:[%s894_s0 + $0x28] sm:$0xff] }
   0x9   :  { %543 = vmatpush3.msra.mxu0 %v44_v3  ;;  %605 = vmatpush3.msra.mxu1 %v44_v3  ;;  %v30_v23 = vld [vmem:[%s894_s0 + $0x60] sm:$0xff]  ;;  %v31_v25 = vld [vmem:[%s894_s0 + $0x68] sm:$0xff]  ;;  %v24_v26 = vld [vmem:[%s894_s0 + $0x30] sm:$0xff] }
   0xa   :  { %544 = vmatprep.subr.mxu0 %v43_v4  ;;  %592 = vmatprep.subr.mxu1 %v43_v4  ;;  %v32_v27 = vld [vmem:[%s894_s0 + $0x70] sm:$0xff]  ;;  %v25_v28 = vld [vmem:[%s894_s0 + $0x38] sm:$0xff]  ;;  %v750_v30 = vld [vmem:[%s895_s2] ss:$0 sm:$0xff] }
   0xb   :  { %545 = vmatpush3.msra.mxu0 %v43_v4  ;;  %606 = vmatpush3.msra.mxu1 %v43_v4  ;;  %v33_v29 = vld [vmem:[%s894_s0 + $0x78] sm:$0xff]  ;;  %v757_v37 = vld [vmem:[%s895_s2 + $0x1] ss:$0 sm:$0xff] }
   0xc   :  { %546 = vmatprep.subr.mxu0 %v42_v5  ;;  %593 = vmatprep.subr.mxu1 %v42_v5 }
   0xd   :  { %547 = vmatpush3.msra.mxu0 %v42_v5  ;;  %607 = vmatpush3.msra.mxu1 %v42_v5 }
   0xe   :  { %548 = vmatprep.subr.mxu0 %v41_v6  ;;  %594 = vmatprep.subr.mxu1 %v41_v6 }
   0xf   :  { %549 = vmatpush3.msra.mxu0 %v41_v6  ;;  %608 = vmatpush3.msra.mxu1 %v41_v6 }
  0x10   :  { %550 = vmatprep.subr.mxu0 %v40_v7  ;;  %595 = vmatprep.subr.mxu1 %v40_v7 }
  0x11   :  { %551 = vmatpush3.msra.mxu0 %v40_v7  ;;  %609 = vmatpush3.msra.mxu1 %v40_v7 }
  0x12   :  { %552 = vmatprep.subr.mxu0 %v39_v8  ;;  %596 = vmatprep.subr.mxu1 %v39_v8 }
  0x13   :  { %553 = vmatpush3.msra.mxu0 %v39_v8  ;;  %610 = vmatpush3.msra.mxu1 %v39_v8 }
  0x14   :  { %554 = vmatprep.subr.mxu0 %v38_v9  ;;  %597 = vmatprep.subr.mxu1 %v38_v9 }
  0x15   :  { %555 = vmatpush3.msra.mxu0 %v38_v9  ;;  %611 = vmatpush3.msra.mxu1 %v38_v9 }
  0x16   :  { %556 = vmatprep.subr.mxu0 %v37_v10  ;;  %598 = vmatprep.subr.mxu1 %v37_v10 }
  0x17   :  { %557 = vmatpush3.msra.mxu0 %v37_v10  ;;  %612 = vmatpush3.msra.mxu1 %v37_v10 }
  0x18   :  { %558 = vmatprep.subr.mxu0 %v36_v11  ;;  %599 = vmatprep.subr.mxu1 %v36_v11 }
  0x19   :  { %559 = vmatpush3.msra.mxu0 %v36_v11  ;;  %613 = vmatpush3.msra.mxu1 %v36_v11 }
  0x1a   :  { %560 = vmatprep.subr.mxu0 %v35_v12  ;;  %600 = vmatprep.subr.mxu1 %v35_v12 }
  0x1b   :  { %561 = vmatpush3.msra.mxu0 %v35_v12  ;;  %614 = vmatpush3.msra.mxu1 %v35_v12 }
  0x1c   :  { %562 = vmatprep.subr.mxu0 %v34_v13  ;;  %601 = vmatprep.subr.mxu1 %v34_v13 }
  0x1d   :  { %563 = vmatpush3.msra.mxu0 %v34_v13  ;;  %615 = vmatpush3.msra.mxu1 %v34_v13 }
  0x1e   :  { %564 = vmatprep.mubr.msk.f32.mxu0 %vm53_vm1, %v18_v14  ;;  %576 = vmatprep.mubr.msk.f32.mxu1 %vm53_vm1, %v26_v15 }
  0x1f   :  { %565 = vmatmul.mubr.msk.f32.vlgmr.msra.gmra.mxu0 %vm53_vm1, %v19_v16  ;;  %577 = vmatmul.mubr.msk.f32.vlgmr.msra.gmra.mxu1 %vm53_vm1, %v27_v17 }
  0x20   :  { %567 = vmatprep.mubr.msk.f32.mxu0 %vm53_vm1, %v20_v18  ;;  %579 = vmatprep.mubr.msk.f32.mxu1 %vm53_vm1, %v28_v19 }
  0x23   :  { %568 = vmatmul.mubr.msk.f32.gmra.mxu0 %vm53_vm1, %v21_v20  ;;  %580 = vmatmul.mubr.msk.f32.gmra.mxu1 %vm53_vm1, %v29_v21 }
  0x24   :  { %570 = vmatprep.mubr.msk.f32.mxu0 %vm53_vm1, %v22_v22  ;;  %582 = vmatprep.mubr.msk.f32.mxu1 %vm53_vm1, %v30_v23 }
  0x27   :  { %571 = vmatmul.mubr.msk.f32.gmra.mxu0 %vm53_vm1, %v23_v24  ;;  %583 = vmatmul.mubr.msk.f32.gmra.mxu1 %vm53_vm1, %v31_v25 }
  0x28   :  { %573 = vmatprep.mubr.msk.f32.mxu0 %vm53_vm1, %v24_v26  ;;  %585 = vmatprep.mubr.msk.f32.mxu1 %vm53_vm1, %v32_v27 }
  0x2b   :  { %574 = vmatmul.mubr.msk.f32.gmra.mxu0 %vm53_vm1, %v25_v28  ;;  %586 = vmatmul.mubr.msk.f32.gmra.mxu1 %vm53_vm1, %v33_v29 }
  0xdf   :  { %v566_v31 = vpop.f32.mrf.mxu0  ;;  %v578_v32 = vpop.f32.mrf.mxu1 }
  0xe0   :  { %v178_v33 = vadd.f32 %v566_v31, %v750_v30  ;;  %v218_v34 = vadd.f32 %v578_v32, %v750_v30 }
  0xe1   :  { %v172_v35 = vpop.f32.mrf.mxu0  ;;  %v212_v36 = vpop.f32.mrf.mxu1 }
  0xe2   :  { %v252_v38 = vmax.f32 %v178_v33, 0.0  ;;  %v260_v39 = vmax.f32 %v218_v34, 0.0  ;;  %v173_v40 = vadd.f32 %v750_v30, %v172_v35  ;;  %v213_v46 = vadd.f32 %v750_v30, %v212_v36 }
  0xe3   :  { %v569_v41 = vpop.f32.mrf.mxu0  ;;  %v581_v42 = vpop.f32.mrf.mxu1  ;;  %v370_v33 = vlaneseq }
  0xe4   :  { %v188_v43 = vadd.f32 %v569_v41, %v750_v30  ;;  %v281_v44 = vmul.f32 %v757_v37, %v260_v39  ;;  %v251_v45 = vmax.f32 %v173_v40, 0.0  ;;  %v228_v48 = vadd.f32 %v581_v42, %v750_v30 }
  0xe5   :  { %v182_v47 = vpop.f32.mrf.mxu0  ;;  %v273_v49 = vmul.f32 %v757_v37, %v252_v38  ;;  %v222_v51 = vpop.f32.mrf.mxu1  ;;  %v259_v56 = vmax.f32 %v213_v46, 0.0  ;;  %v791_v35 = vand.u32 127, %v370_v33  ;;  %v796_v39 = vstv %s896_s3 }
  0xe6   :  { %v254_v50 = vmax.f32 %v188_v43, 0.0  ;;  %306 = vadd.xlane.f32.xlu1 %v281_v44  ;;  %v262_v52 = vmax.f32 %v228_v48, 0.0  ;;  %v183_v54 = vadd.f32 %v750_v30, %v182_v47  ;;  %v223_v57 = vadd.f32 %v750_v30, %v222_v51 }
  0xe7   :  { %290 = vadd.xlane.f32.xlu0 %v273_v49  ;;  %v572_v53 = vpop.f32.mrf.mxu0  ;;  %v272_v58 = vmul.f32 %v757_v37, %v251_v45  ;;  %v584_v61 = vpop.f32.mrf.mxu1  ;;  %v280_v3 = vmul.f32 %v757_v37, %v259_v56  ;;  %v798_v40 = vshrl.u32 %v370_v33, 7  ;;  %v801_v41 = vadd.s32 4294967224, %v791_v35 }
  0xe8   :  { %v275_v55 = vmul.f32 %v757_v37, %v254_v50  ;;  %v283_v60 = vmul.f32 %v757_v37, %v262_v52  ;;  %v253_v63 = vmax.f32 %v183_v54, 0.0  ;;  %v198_v0 = vadd.f32 %v572_v53, %v750_v30 }
  0xe9   :  { %v192_v59 = vpop.f32.mrf.mxu0  ;;  %v261_v1 = vmax.f32 %v223_v57, 0.0  ;;  %v232_v5 = vpop.f32.mrf.mxu1  ;;  %v238_v14 = vadd.f32 %v584_v61, %v750_v30  ;;  %v390_v42 = vadd.s32 4294967272, %v791_v35  ;;  %v809_v45 = vadd.s32 4294967232, %v791_v35 }
  0xea   :  { %294 = vadd.xlane.f32.xlu1 %v275_v55  ;;  %v193_v2 = vadd.f32 %v750_v30, %v192_v59  ;;  %v256_v6 = vmax.f32 %v198_v0, 0.0  ;;  %v274_v8 = vmul.f32 %v757_v37, %v253_v63  ;;  %v233_v17 = vadd.f32 %v750_v30, %v232_v5 }
  0xeb   :  { %288 = vadd.xlane.f32.xlu0 %v272_v58  ;;  %v575_v62 = vpop.f32.mrf.mxu0  ;;  %v282_v11 = vmul.f32 %v757_v37, %v261_v1  ;;  %v587_v12 = vpop.f32.mrf.mxu1  ;;  %v264_v20 = vmax.f32 %v238_v14, 0.0  ;;  %v383_v48 = vadd.s32 4294967280, %v791_v35  ;;  %v435_v49 = vsub.s32 %v801_v41, %v798_v40 }
  0xec   :  { %v208_v7 = vadd.f32 %v575_v62, %v750_v30  ;;  %v255_v9 = vmax.f32 %v193_v2, 0.0  ;;  %v277_v15 = vmul.f32 %v757_v37, %v256_v6  ;;  %v248_v21 = vadd.f32 %v587_v12, %v750_v30 }
  0xed   :  { %v202_v4 = vpop.f32.mrf.mxu0  ;;  %v242_v19 = vpop.f32.mrf.mxu1  ;;  %v263_v23 = vmax.f32 %v233_v17, 0.0  ;;  %v285_v27 = vmul.f32 %v757_v37, %v264_v20  ;;  %v817_v51 = vadd.s32 4294967208, %v791_v35  ;;  %v820_v52 = vadd.s32 4294967216, %v791_v35 }
  0xee   :  { %310 = vadd.xlane.f32.xlu1 %v283_v60  ;;  %v203_v10 = vadd.f32 %v750_v30, %v202_v4  ;;  %v258_v13 = vmax.f32 %v208_v7, 0.0  ;;  %v276_v18 = vmul.f32 %v757_v37, %v255_v9  ;;  %v243_v24 = vadd.f32 %v750_v30, %v242_v19 }
  0xef   :  { %304 = vadd.xlane.f32.xlu0 %v280_v3  ;;  %v266_v26 = vmax.f32 %v248_v21, 0.0  ;;  %v284_v29 = vmul.f32 %v757_v37, %v263_v23  ;;  %v393_v53 = vsub.s32 %v390_v42, %v798_v40  ;;  %v374_v54 = vsub.s32 %v791_v35, %v798_v40 }
  0xf0   :  { %v257_v16 = vmax.f32 %v203_v10, 0.0  ;;  %v279_v22 = vmul.f32 %v757_v37, %v258_v13  ;;  %v265_v28 = vmax.f32 %v243_v24, 0.0  ;;  %v404_v56 = vadd.s32 4294967256, %v791_v35 }
  0xf1   :  { %v287_v31 = vmul.f32 %v757_v37, %v266_v26  ;;  %v428_v57 = vsub.s32 %v809_v45, %v798_v40  ;;  %v397_v59 = vadd.s32 4294967264, %v791_v35  ;;  %v418_v60 = vadd.s32 4294967240, %v791_v35 }
  0xf2   :  { %292 = vadd.xlane.f32.xlu1 %v274_v8  ;;  %v278_v25 = vmul.f32 %v757_v37, %v257_v16  ;;  %v286_v32 = vmul.f32 %v757_v37, %v265_v28  ;;  %v376_v37 = vadd.s32 4294967288, %v791_v35  ;;  %v386_v63 = vsub.s32 %v383_v48, %v798_v40 }
  0xf3   :  { %308 = vadd.xlane.f32.xlu0 %v282_v11  ;;  %v449_v2 = vsub.s32 %v817_v51, %v798_v40  ;;  %v442_v3 = vsub.s32 %v820_v52, %v798_v40  ;;  %v411_v4 = vadd.s32 4294967248, %v791_v35  ;;  %v407_v7 = vsub.s32 %v404_v56, %v798_v40 }
  0xf4   :  { %v379_v50 = vsub.s32 %v376_v37, %v798_v40  ;;  %v400_v9 = vsub.s32 %v397_v59, %v798_v40  ;;  %v421_v10 = vsub.s32 %v418_v60, %v798_v40  ;;  %v842_v11 = vadd.s32 4294967192, %v791_v35 }
  0xf5   :  { %v453_v19 = vadd.s32 4294967200, %v791_v35  ;;  %v467_v60 = vadd.s32 4294967184, %v791_v35 }
  0xf6   :  { %298 = vadd.xlane.f32.xlu1 %v277_v15 }
  0xf7   :  { %296 = vadd.xlane.f32.xlu0 %v276_v18  ;;  %v414_v18 = vsub.s32 %v411_v4, %v798_v40 }
  0xfa   :  { %302 = vadd.xlane.f32.xlu1 %v279_v22 }
  0xfb   :  { %300 = vadd.xlane.f32.xlu0 %v278_v25 }
  0xfe   :  { %314 = vadd.xlane.f32.xlu1 %v285_v27 }
  0xff   :  { %312 = vadd.xlane.f32.xlu0 %v284_v29 }
 0x102   :  { %318 = vadd.xlane.f32.xlu1 %v287_v31  ;;  %v463_v31 = vsub.s32 %v842_v11, %v798_v40 }
 0x103   :  { %316 = vadd.xlane.f32.xlu0 %v286_v32 }
 0x16f   :  { %v789_v30 = vpop.xlane.xlu1 %306 }
 0x170   :  { %v291_v34 = vpop.xlane.xlu0 %290  ;;  %v331_v26 = vadd.f32 %v796_v39, %v789_v30 }
 0x171   :  { %v323_v46 = vadd.f32 %v796_v39, %v291_v34 }
 0x173   :  { %v295_v36 = vpop.xlane.xlu1 %294  ;;  %v339_v61 = vmax.f32 %v323_v46, 0.0 }
 0x174   :  { %v289_v38 = vpop.xlane.xlu0 %288  ;;  %v325_v62 = vadd.f32 %v796_v39, %v295_v36  ;;  %v456_v36 = vsub.s32 %v453_v19, %v798_v40 }
 0x175   :  { %v322_v43 = vadd.f32 %v796_v39, %v289_v38  ;;  %v380_v12 = vrot.slane %v339_v61, %v379_v50  ;;  %v474_v50 = vadd.s32 4294967176, %v791_v35 }
 0x176   :  { %v341_v13 = vmax.f32 %v325_v62, 0.0 }
 0x177   :  { %v806_v44 = vpop.xlane.xlu1 %310  ;;  %v338_v55 = vmax.f32 %v322_v43, 0.0  ;;  %v477_v4 = vsub.s32 %v474_v50, %v798_v40 }
 0x178   :  { %v305_v47 = vpop.xlane.xlu0 %304  ;;  %v394_v27 = vrot.slane %v341_v13, %v393_v53  ;;  %v333_v38 = vadd.f32 %v796_v39, %v806_v44  ;;  %v347_v53 = vmax.f32 %v331_v26, 0.0 }
 0x179   :  { %v375_v5 = vrot.slane %v338_v55, %v374_v54  ;;  %v330_v22 = vadd.f32 %v796_v39, %v305_v47 }
 0x17a   :  { %v349_v61 = vmax.f32 %v333_v38, 0.0 }
 0x17b   :  { %v293_v58 = vpop.xlane.xlu1 %292  ;;  %v382_v20 = vsel %vm381_vm2, %v380_v12, %v375_v5  ;;  %v346_v43 = vmax.f32 %v330_v22, 0.0 }
 0x17c   :  { %v324_v0 = vadd.f32 %v796_v39, %v293_v58  ;;  %v309_v1 = vpop.xlane.xlu0 %308  ;;  %v450_v41 = vrot.slane %v349_v61, %v449_v2 }
 0x17d   :  { %v332_v32 = vadd.f32 %v796_v39, %v309_v1 }
 0x17e   :  { %v340_v6 = vmax.f32 %v324_v0, 0.0 }
 0x17f   :  { %v299_v8 = vpop.xlane.xlu1 %298  ;;  %v348_v58 = vmax.f32 %v332_v32, 0.0 }
 0x180   :  { %v387_v14 = vrot.slane %v340_v6, %v386_v63  ;;  %v327_v15 = vadd.f32 %v796_v39, %v299_v8  ;;  %v297_v16 = vpop.xlane.xlu0 %296  ;;  %v429_v63 = vrot.slane %v346_v43, %v428_v57  ;;  %v436_v6 = vrot.slane %v347_v53, %v435_v49 }
 0x181   :  { %v326_v17 = vadd.f32 %v796_v39, %v297_v16  ;;  %v443_v45 = vrot.slane %v348_v58, %v442_v3 }
 0x182   :  { %v343_v21 = vmax.f32 %v327_v15, 0.0  ;;  %v389_v23 = vsel %vm388_vm3, %v387_v14, %v382_v20 }
 0x183   :  { %v342_v24 = vmax.f32 %v326_v17, 0.0  ;;  %v303_v25 = vpop.xlane.xlu1 %302  ;;  %v396_v30 = vsel %vm395_vm4, %v394_v27, %v389_v23 }
 0x184   :  { %v329_v28 = vadd.f32 %v796_v39, %v303_v25  ;;  %v301_v29 = vpop.xlane.xlu0 %300  ;;  %v408_v37 = vrot.slane %v343_v21, %v407_v7 }
 0x185   :  { %v401_v33 = vrot.slane %v342_v24, %v400_v9  ;;  %v328_v34 = vadd.f32 %v796_v39, %v301_v29 }
 0x186   :  { %v345_v42 = vmax.f32 %v329_v28, 0.0 }
 0x187   :  { %v403_v46 = vsel %vm402_vm5, %v401_v33, %v396_v30  ;;  %v344_v47 = vmax.f32 %v328_v34, 0.0  ;;  %v315_v48 = vpop.xlane.xlu1 %314 }
 0x188   :  { %v422_v54 = vrot.slane %v345_v42, %v421_v10  ;;  %v335_v55 = vadd.f32 %v796_v39, %v315_v48  ;;  %v313_v56 = vpop.xlane.xlu0 %312  ;;  %v410_v62 = vsel %vm409_vm6, %v408_v37, %v403_v46  ;;  %v470_v10 = vsub.s32 %v467_v60, %v798_v40 }
 0x189   :  { %v415_v59 = vrot.slane %v344_v47, %v414_v18  ;;  %v334_v44 = vadd.f32 %v796_v39, %v313_v56 }
 0x18a   :  { %v351_v7 = vmax.f32 %v335_v55, 0.0 }
 0x18b   :  { %v417_v0 = vsel %vm416_vm7, %v415_v59, %v410_v62  ;;  %v350_v1 = vmax.f32 %v334_v44, 0.0  ;;  %v319_v5 = vpop.xlane.xlu1 %318 }
 0x18c   :  { %v424_v35 = vsel %vm423_vm8, %v422_v54, %v417_v0  ;;  %v337_v8 = vadd.f32 %v796_v39, %v319_v5  ;;  %v317_v9 = vpop.xlane.xlu0 %316  ;;  %v464_v3 = vrot.slane %v351_v7, %v463_v31 }
 0x18d   :  { %v431_v57 = vsel %vm430_vm9, %v429_v63, %v424_v35  ;;  %v336_v11 = vadd.f32 %v796_v39, %v317_v9  ;;  %v457_v14 = vrot.slane %v350_v1, %v456_v36 }
 0x18e   :  { %v438_v49 = vsel %vm437_vm10, %v436_v6, %v431_v57  ;;  %v353_v12 = vmax.f32 %v337_v8, 0.0 }
 0x18f   :  { %v445_v13 = vsel %vm444_vm11, %v443_v45, %v438_v49  ;;  %v352_v52 = vmax.f32 %v336_v11, 0.0 }
 0x190   :  { %v452_v15 = vsel %vm451_vm12, %v450_v41, %v445_v13  ;;  %v478_v16 = vrot.slane %v353_v12, %v477_v4 }
 0x191   :  { %v459_v17 = vsel %vm458_vm13, %v457_v14, %v452_v15  ;;  %v471_v39 = vrot.slane %v352_v52, %v470_v10 }
 0x192   :  { %v466_v18 = vsel %vm465_vm14, %v464_v3, %v459_v17 }
 0x193   :  { %v473_v40 = vsel %vm472_vm15, %v471_v39, %v466_v18 }
 0x194   :  { %v480_v51 = vsel %vm479_vm0, %v478_v16, %v473_v40 }
 0x195   :  { %482 = vst [vmem:[%s897_s4] sm:$0x1] %v480_v51 }

</bundles_post_ra>
